<compile_context>
chip_gen: v6e
topology: v6e:2x2x1
jax: 0.10.0
libtpu: 0.0.40
codegen_flags: <defaults>
</compile_context>

<pallas_src>
import functools

import jax
import jax.numpy as jnp
from jax.experimental import pallas as pl
from jax.experimental.pallas import tpu as pltpu

_LANE = 128


def _round_up(v, m):
    return ((v + m - 1) // m) * m


def _sublane_for(dtype):
    # Sub-32-bit dtypes pack 16 / 32 rows per sublane group; align tiles so
    # the last sublane group is not a masked partial store.
    return {4: 8, 2: 16, 1: 32}.get(jnp.dtype(dtype).itemsize, 8)


def _vmem_capacity_bytes():
    # Generation-aware: 128 MiB on v5e/v6e, 64 MiB per TensorCore on v7x.
    try:
        return int(pltpu.get_tpu_info().vmem_capacity_bytes)
    except Exception:
        return 64 * 1024 * 1024  # conservative (v7x-sized) fallback


def _rmsnorm_kernel(x_ref, gamma_ref, beta_ref, o_ref, *, eps):
    # Block is (row_tile, H): last dim is the full hidden dim, so the reduce
    # covers exactly H lanes -> no lane masking / true-H correction needed.
    x = x_ref[...].astype(jnp.float32)
    # Cross-lane reduce -> XLU, rsqrt -> EUP: both sit in bundle slots the
    # load/store path does not use.
    ms = jnp.mean(x * x, axis=-1, keepdims=True)
    inv_rms = jax.lax.rsqrt(ms + jnp.float32(eps))
    gamma = gamma_ref[...].astype(jnp.float32)  # (1, H)
    beta = beta_ref[...].astype(jnp.float32)    # (1, H)
    # Epilogue kept in f32 to match the reference module numerics; the kernel
    # is HBM-bound so the extra VALU width is hidden under the DMAs.
    o_ref[...] = (gamma * (x * inv_rms) + beta).astype(o_ref.dtype)


def rmsnorm(x, gamma, beta, eps=1e-8, *, row_tile=None):
    """RMSNorm over the last axis of x.  x: any shape [..., H]."""
    orig_shape = x.shape
    H = orig_shape[-1]
    x2d = x.reshape(-1, H)  # metadata-only reshape, no HBM traffic
    R = x2d.shape[0]

    sublane = _sublane_for(x.dtype)
    vmem_cap = _vmem_capacity_bytes()
    tile_budget = int(min(vmem_cap // 4, 32 * 1024 * 1024))   # 32 MiB v5e/v6e, 16 MiB v7x
    vmem_limit = int(min(vmem_cap // 2, 64 * 1024 * 1024))    # 64 MiB v5e/v6e, 32 MiB v7x

    if row_tile is None:
        itemsize = jnp.dtype(x.dtype).itemsize
        # Per-row resident VMEM per step: 2x double-buffered input +
        # 2x double-buffered output + f32-upcast compiler scratch.
        per_row_bytes = 4 * H * itemsize + 4 * H
        row_tile = tile_budget // max(per_row_bytes, 1)
        row_tile = max(sublane, min(2048, row_tile))
        # Grid-depth floor: aim for >= 4 grid steps so prefetch/compute/
        # writeback overlap and the parallel axis can shard across v7x's 2 TCs.
        row_tile = min(row_tile, max(sublane, _round_up(pl.cdiv(R, 4), sublane)))
    row_tile = max(sublane, (row_tile // sublane) * sublane)
    if R <= sublane:
        row_tile = R  # full-extent row block (legal even if unaligned)

    num_tiles = pl.cdiv(R, row_tile)

    g2d = gamma.reshape(1, H)
    b2d = beta.reshape(1, H)

    kernel = functools.partial(_rmsnorm_kernel, eps=float(eps))

    out = pl.pallas_call(
        kernel,
        out_shape=jax.ShapeDtypeStruct((R, H), x.dtype),
        grid_spec=pltpu.PrefetchScalarGridSpec(
            num_scalar_prefetch=0,
            grid=(num_tiles,),
            in_specs=[
                pl.BlockSpec((row_tile, H), lambda i: (i, 0)),
                pl.BlockSpec((1, H), lambda i: (0, 0)),
                pl.BlockSpec((1, H), lambda i: (0, 0)),
            ],
            out_specs=pl.BlockSpec((row_tile, H), lambda i: (i, 0)),
        ),
        compiler_params=pltpu.CompilerParams(
            dimension_semantics=("parallel",),
            vmem_limit_bytes=vmem_limit,
        ),
    )(x2d, g2d, b2d)

    return out.reshape(orig_shape)


if __name__ == "__main__":
    # Module: RMSNorm(normalized_shape=hidden). Input: (batch, seq, hidden).
    batch, seq, hidden = 2, 8, 32
    key = jax.random.PRNGKey(0)
    x = jax.random.normal(key, (batch, seq, hidden), dtype=jnp.float32)

    # nn.Parameter(torch.ones(H)) / nn.Parameter(torch.zeros(H)).
    gamma = jnp.ones((hidden,), dtype=jnp.float32)
    beta = jnp.zeros((hidden,), dtype=jnp.float32)

    out = rmsnorm(x, gamma, beta, eps=1e-8)
    out = jax.block_until_ready(out)

    # Pure-JAX reference check.
    rms = jnp.sqrt(jnp.mean(x ** 2, axis=-1, keepdims=True) + 1e-8)
    ref = gamma * (x / rms) + beta
    assert out.shape == x.shape and out.dtype == x.dtype
    assert jnp.allclose(out, ref, atol=1e-5, rtol=1e-5)

    print("KERNEL_OK")
</pallas_src>

<mosaic_0001>
module attributes {stable_mosaic.version = 11 : i64} {
  func.func @_rmsnorm_kernel(%arg0: i32, %arg1: memref<8x32xf32, #tpu.memory_space<vmem>>, %arg2: memref<1x32xf32, #tpu.memory_space<vmem>>, %arg3: memref<1x32xf32, #tpu.memory_space<vmem>>, %arg4: memref<8x32xf32, #tpu.memory_space<vmem>>) attributes {dimension_semantics = [#tpu.dimension_semantics<parallel>], iteration_bounds = array<i64: 2>, scalar_prefetch = 0 : i64, scratch_operands = 0 : i64, tpu.core_type = #tpu.core_type<tc>, window_params = [{transform_indices = @transform_0, window_bounds = array<i64: 8, 32>}, {pipeline_mode = #tpu.pipeline_mode<synchronous>, transform_indices = @transform_1, window_bounds = array<i64: 1, 32>}, {pipeline_mode = #tpu.pipeline_mode<synchronous>, transform_indices = @transform_2, window_bounds = array<i64: 1, 32>}, {transform_indices = @transform_3, window_bounds = array<i64: 8, 32>}]} {
    %c0 = arith.constant 0 : index
    %c0_0 = arith.constant 0 : index
    %0 = vector.load %arg1[%c0, %c0_0] : memref<8x32xf32, #tpu.memory_space<vmem>>, vector<8x32xf32>
    %1 = arith.mulf %0, %0 : vector<8x32xf32>
    %cst = arith.constant dense<0.000000e+00> : vector<8xf32>
    %2 = vector.multi_reduction <add>, %1, %cst [1] : vector<8x32xf32> to vector<8xf32>
    %3 = vector.shape_cast %2 : vector<8xf32> to vector<8x1xf32>
    %cst_1 = arith.constant 3.200000e+01 : f32
    %4 = vector.broadcast %cst_1 : f32 to vector<8x1xf32>
    %5 = arith.divf %3, %4 : vector<8x1xf32>
    %cst_2 = arith.constant 9.99999993E-9 : f32
    %6 = vector.broadcast %cst_2 : f32 to vector<8x1xf32>
    %7 = arith.addf %5, %6 : vector<8x1xf32>
    %8 = math.rsqrt %7 : vector<8x1xf32>
    %c0_3 = arith.constant 0 : index
    %c0_4 = arith.constant 0 : index
    %9 = vector.load %arg2[%c0_3, %c0_4] : memref<1x32xf32, #tpu.memory_space<vmem>>, vector<1x32xf32>
    %c0_5 = arith.constant 0 : index
    %c0_6 = arith.constant 0 : index
    %10 = vector.load %arg3[%c0_5, %c0_6] : memref<1x32xf32, #tpu.memory_space<vmem>>, vector<1x32xf32>
    %11 = vector.broadcast %8 : vector<8x1xf32> to vector<8x32xf32>
    %12 = arith.mulf %0, %11 : vector<8x32xf32>
    %13 = vector.broadcast %9 : vector<1x32xf32> to vector<8x32xf32>
    %14 = arith.mulf %13, %12 : vector<8x32xf32>
    %15 = vector.broadcast %10 : vector<1x32xf32> to vector<8x32xf32>
    %16 = arith.addf %14, %15 : vector<8x32xf32>
    %c0_7 = arith.constant 0 : index
    %c0_8 = arith.constant 0 : index
    %17 = vector.load %arg4[%c0_7, %c0_8] : memref<8x32xf32, #tpu.memory_space<vmem>>, vector<8x32xf32>
    tpu.vector_store %arg4[%c0_7, %c0_8], %16 {strides = array<i32>} : memref<8x32xf32, #tpu.memory_space<vmem>>, vector<8x32xf32>,
    return
  }
  func.func @transform_0(%arg0: i32) -> (i32, i32) {
    %c0_i32 = arith.constant 0 : i32
    %c0_i32_0 = arith.constant 0 : i32
    return %arg0, %c0_i32 : i32, i32
  }
  func.func @transform_1(%arg0: i32) -> (i32, i32) {
    %c0_i32 = arith.constant 0 : i32
    %c0_i32_0 = arith.constant 0 : i32
    %c0_i32_1 = arith.constant 0 : i32
    return %c0_i32, %c0_i32_0 : i32, i32
  }
  func.func @transform_2(%arg0: i32) -> (i32, i32) {
    %c0_i32 = arith.constant 0 : i32
    %c0_i32_0 = arith.constant 0 : i32
    %c0_i32_1 = arith.constant 0 : i32
    return %c0_i32, %c0_i32_0 : i32, i32
  }
  func.func @transform_3(%arg0: i32) -> (i32, i32) {
    %c0_i32 = arith.constant 0 : i32
    %c0_i32_0 = arith.constant 0 : i32
    return %arg0, %c0_i32 : i32, i32
  }
}

</mosaic_0001>

<bundles_post_ra>
// kernel: tpu_custom_call.1
= control target key start
LH: loop header
LB: loop body
LE: loop exit
PB: predicated region body
PF: predicated region fallthrough
CT: control target
= control target key end

     0   :  { %8 = vsyncpa [#allocation3], 0  ;;  %s625_s0 = inlined_call_operand.hbm [shape: f32[16,32], index: 0, kind: input, shape index: {}]   ;;  %s626_s1 = inlined_call_operand.vmem [shape: f32[1,32], index: 1, kind: input, shape index: {}]   ;;  %s627_s2 = inlined_call_operand.vmem [shape: f32[1,32], index: 2, kind: input, shape index: {}]   ;;  %s628_s3 = inlined_call_operand.hbm [shape: f32[16,32], index: 3, kind: output, shape index: {}]  }
   0x1   :  { %10 = vsyncpa [#allocation3 + $0x1], 0 }
   0x2   :  { %11 = vsyncpa [#allocation4], 0 }
   0x3   :  { %13 = vsyncpa [#allocation4 + $0x1], 0  ;;  %s476_s12 = smov 0   ;;  %s478_s13 = smov 0  }
   0x4   :  { %s480_s14 = smov 0   ;;  %s482_s15 = smov 0  }
   0x5 LB: > { %s497_s16 = sadd.s32 4294967295, %s452_s15   ;;  %s298_s17 = sadd.s32 4294967294, %s452_s15   ;;  %s452_s15 = sphi %s482_s15, %s645_s15   ;;  %s448_s14 = sphi %s480_s14, %s644_s14   ;;  %s444_s13 = sphi %s478_s13, %s643_s13   ;;  %s440_s12 = sphi %s476_s12, %s642_s12  }
   0x6   : > { %s501_s18 = sadd.s32 1, %s452_s15   ;;  %s26_s19 = sadd.s32 1, %s448_s14 }
   0x7   : > { %s23_s20 = ssub.s32 %s452_s15, %s501_s18  ;;  %p33_p0 = scmp.ne.s32.totalorder %s448_s14, %s444_s13 }
   0x8   : > { %p24_p1 = scmp.eq.s32.totalorder %s23_s20, 0  ;;  %p34_p2 = scmp.eq.s32.totalorder %s452_s15, 0 }
   0x9   : > { %p39_p3 = scmp.ne.s32.totalorder %s444_s13, %s440_s12  ;;  %p40_p4 = scmp.eq.s32.totalorder %s497_s16, 0 }
   0xa   : > { %s513_s21 = scalar_select %p24_p1, %s448_s14, %s26_s19  }
   0xb   : > { %p515_p5 = por %p34_p2, %p33_p0  ;;  %p519_p6 = por %p40_p4, %p39_p3 }
   0xc   : > { %p105_p7 = scmp.eq.s32.totalorder %s497_s16, 1  ;;  %p111_p8 = scmp.eq.s32.totalorder %s298_s17, 1 }
   0xd   : > { %s632_s23 = scalar_select %p519_p6, 1, 0 }
   0xe   : > { %p324_p10 = scmp.lt.s32.totalorder %s452_s15, 2  ;;  %p526_p11 = por %p105_p7, %p33_p0 }
   0xf   : > { %p530_p12 = por %p111_p8, %p39_p3  ;;  %s137_s26 = sand.u32 1, %s448_s14  }
  0x10   : > { %s633_s24 = scalar_select %p526_p11, 1, 0 }
  0x11   : > { %s634_s25 = scalar_select %p530_p12, 1, 0 }
  0x12   : > { %s302_s27 = sshll.u32 %s452_s15, 7  ;;  %s301_s28 = sshll.u32 %s137_s26, 3 }
  0x13   : > { %s539_s4 = scalar_lea.hbm %s625_s0, %s302_s27  ;;  %s141_s5 = scalar_lea.vmem [#allocation2], %s301_s28 }
  0x14   : > { %s148_s6 = sshll.u32 %s141_s5, 4  ;;  %p543_p13 = pnand %p324_p10, %p515_p5  ;;  %s547_s6 = int_to_ptr.vmem [resolvable:$true] %s148_s6 }
  0x15   : > { %s138_s8 = scalar_lea.sflag [#allocation3], %s137_s26  ;;  %s360_s9 = scalar_lea.hbm %s539_s4, 128 }
  0x16   : > { %p361_p2 = scmp.ne.s32.totalorder %s539_s4, %s360_s9  ;;  %p362_p3 = pneg %p543_p13 }
  0x17   : > { %s365_s17 = scalar_lea.hbm %s625_s0, 256  ;;  %p366_p5 = scmp.lt.s32.totalorder %s539_s4, %s625_s0 }
  0x18   : > { %p363_p4 = pnand %p362_p3, %p361_p2  ;;  %p367_p8 = scmp.lt.s32.totalorder %s365_s17, %s360_s9 }
  0x1a   : > { %p364_p7 = pneg %p363_p4  ;;  %p368_p10 = por %p367_p8, %p366_p5 }
  0x1c   : > { %p369_p9 = pnand %p368_p10, %p364_p7 }
  0x1e   : > { %372 = shalt.err (!%p369_p9)
}
  0x1f   : > { %s373_s22 = scalar_lea.vmem %s547_s6, 128  ;;  %s454_s26 = smov [#allocation2]  }
  0x20   : > { %p374_p0 = scmp.ne.s32.totalorder %s547_s6, %s373_s22  ;;  %s378_s27 = sshll.u32 %s454_s26, 4  ;;  %s379_s27 = int_to_ptr.vmem [resolvable:$false] %s378_s27 }
  0x21   : > { %s380_s28 = scalar_lea.vmem %s379_s27, 256  ;;  %p381_p4 = scmp.lt.s32.totalorder %s547_s6, %s379_s27 }
  0x22   : > { %p376_p1 = pnand %p374_p0, %p362_p3  ;;  %p382_p12 = scmp.lt.s32.totalorder %s380_s28, %s373_s22 }
  0x24   : > { %p377_p2 = pneg %p376_p1  ;;  %p383_p11 = por %p382_p12, %p381_p4 }
  0x26   : > { %p384_p6 = pnand %p383_p11, %p377_p2 }
  0x28   : > { %387 = shalt.err (!%p384_p6)
}
  0x29   : > { %319 = dma.hbm_to_vmem [thread:$0]  (!%p543_p13), %s539_s4, 128, %s547_s6, %s138_s8  }
  0x2a   : > { %p636_p9 = scmp.lt.s32.totalorder %s452_s15, 3  ;;  %p637_p7 = scmp.ge.s32.totalorder %s452_s15, 1 }
  0x2c   : > { %p154_p0 = pnand %p637_p7, %p636_p9 }
  0x2d   : > { %s574_s29 = sand.u32 (!%p154_p0), 1, %s444_s13   ;;  %p638_p6 = scmp.ne.s32.totalorder (!%p154_p0), %s632_s23, 0 }
  0x2e   : > { %157 = sbr.rel (%p154_p0) target bundleno = 231 (0xe7), region = 32  ;;  %s304_s30 = sshll.u32 (!%p154_p0), %s574_s29, 3 }
  0x2f   : > { %s160_s5 = scalar_lea.sflag (!%p154_p0), [#allocation3], %s574_s29  ;;  %s163_s9 = scalar_lea.vmem (!%p154_p0), [#allocation2], %s304_s30 }
  0x33   : > { %431 = dma.done.wait (%p638_p6), %s160_s5, 128  }
  0x34   : > { %433 = vsyncadd (%p638_p6), %s160_s5, 4294967168  ;;  %v186_v0 = vld [vmem:[%s163_s9] sm:$0xff]  ;;  %vm188_vm0 = vcmask 261120   ;;  %s309_s8 = sshll.u32 %s497_s16, 7  ;;  %s185_s10 = scalar_lea.vmem [#allocation5], %s304_s30 }
  0x35   : > { %v187_v1 = vmul.f32 %v186_v0, %v186_v0  ;;  %v306_v7 = vld [vmem:[%s626_s1] ss:$0 sm:$0xff]  ;;  %s228_s11 = sshll.u32 %s185_s10, 4  ;;  %s226_s20 = scalar_lea.hbm %s628_s3, %s309_s8  ;;  %s229_s11 = int_to_ptr.vmem [resolvable:$true] %s228_s11 }
  0x36   : > { %v307_v9 = vld [vmem:[%s627_s2] ss:$0 sm:$0xff]  ;;  %s215_s22 = scalar_lea.sflag [#allocation4], %s574_s29  ;;  %s388_s26 = scalar_lea.vmem %s229_s11, 128 }
  0x37   : > { %v189_v2 = vsel %vm188_vm0, %v187_v1, 0.0  ;;  %p389_p11 = scmp.ne.s32.totalorder %s229_s11, %s388_s26  ;;  %p639_p12 = scmp.ne.s32.totalorder %s633_s24, 0 }
  0x38   : > { %190 = vadd.xlane.f32.xlu0 %v189_v2  ;;  %s455_s27 = smov [#allocation5]  }
  0x39   : > { %p390_p13 = pnand %p389_p11, %p639_p12  ;;  %s392_s28 = sshll.u32 %s455_s27, 4  ;;  %s393_s28 = int_to_ptr.vmem [resolvable:$false] %s392_s28 }
  0x3a   : > { %s394_s16 = scalar_lea.vmem %s393_s28, 256  ;;  %p395_p3 = scmp.lt.s32.totalorder %s229_s11, %s393_s28 }
  0x3b   : > { %p391_p1 = pneg %p390_p13  ;;  %p396_p5 = scmp.lt.s32.totalorder %s394_s16, %s388_s26 }
  0x3d   : > { %p397_p8 = por %p396_p5, %p395_p3 }
  0x3f   : > { %p398_p10 = pnand %p397_p8, %p391_p1 }
  0xc1   : > { %v191_v3 = vpop.xlane.xlu0 %190 }
  0xc2   : > { %v193_v4 = vmul.f32 0.03125, %v191_v3 }
  0xc4   : > { %v194_v5 = vadd.f32 1e-08, %v193_v4 }
  0xc6   : > { %358 = vrsqrt.f32 %v194_v5 }
  0xd3   : > { %v359_v6 = vpop.eup %358 }
  0xd4   : > { %v198_v8 = vmul.f32 %v359_v6, %v186_v0 }
  0xd6   : > { %v205_v10 = vmul.f32 %v306_v7, %v198_v8 }
  0xd8   : > { %v212_v11 = vadd.f32 %v307_v9, %v205_v10 }
  0xda   : > { %213 = vst.msk [vmem:[%s185_s10] sm:$0xff] %vm188_vm0, %v212_v11 }
  0xdb   : > { %401 = shalt.err (!%p398_p10)
}
  0xdc   : > { %s402_s30 = scalar_lea.hbm %s226_s20, 128  ;;  %s406_s9 = scalar_lea.hbm %s628_s3, 256 }
  0xdd   : > { %p403_p2 = scmp.ne.s32.totalorder %s226_s20, %s402_s30  ;;  %p407_p7 = scmp.lt.s32.totalorder %s226_s20, %s628_s3 }
  0xde   : > { %p408_p0 = scmp.lt.s32.totalorder %s406_s9, %s402_s30 }
  0xdf   : > { %p404_p4 = pnand %p403_p2, %p639_p12 }
  0xe0   : > { %p409_p6 = por %p408_p0, %p407_p7 }
  0xe1   : > { %p405_p9 = pneg %p404_p4 }
  0xe3   : > { %p410_p11 = pnand %p409_p6, %p405_p9 }
  0xe5   : > { %413 = shalt.err (!%p410_p11)
}
  0xe6   : > { %314 = dma.vmem_to_hbm [thread:$0]  (%p639_p12), %s229_s11, 128, %s226_s20, %s215_s22  }
  0xe7 PF: > { %s240_s23 = sand.u32 1, %s440_s12   ;;  %p640_p13 = scmp.ne.s32.totalorder %s634_s25, 0 }
  0xe8   : > { %p641_p1 = scmp.ge.s32.totalorder %s452_s15, 2  ;;  %s241_s7 = scalar_lea.sflag [#allocation4], %s240_s23 }
  0xea   : > { %p321_p3 = pnand %p641_p1, %p640_p13 }
  0xec   : > { %p322_p5 = pneg %p321_p3 }
  0xee   : > { %435 = dma.done.wait (%p322_p5), %s241_s7, 128  }
  0xef   : > { %437 = vsyncadd (%p322_p5), %s241_s7, 4294967168  ;;  %p16_p8 = scmp.ge.s32.totalorder %s501_s18, 4   ;;  %s642_s12 = smov %s444_s13 }
  0xf0   : > { %s643_s13 = smov %s448_s14  ;;  %s644_s14 = smov %s513_s21 }
  0xf1   : > { %s645_s15 = smov %s501_s18  ;;  %18 = sbr.rel (!%p16_p8) target bundleno = 5 (0x5), region = 77 }
  0xf6   :  { %246 = vsyncpa [#allocation3], 1 }
  0xf7   :  { %248 = vsyncpa [#allocation3 + $0x1], 1 }
  0xf8   :  { %249 = vsyncpa [#allocation4], 1 }
  0xf9   :  { %251 = vsyncpa [#allocation4 + $0x1], 1 }

</bundles_post_ra>
